<compile_context>
chip_gen: v6e
topology: v6e:2x2x1
jax: 0.10.0
libtpu: 0.0.40
codegen_flags: <defaults>
</compile_context>

<pallas_src>
import jax
import jax.numpy as jnp
from jax.experimental import pallas as pl
from jax.experimental.pallas import tpu as pltpu


_TARGET_BLOCK_BYTES = 2 << 20   # per-block bytes; x4 (in+out, double-buffered) ~= 8 MiB VMEM
_MIN_GRID_BYTES = 1 << 20       # arrays >= 1 MiB get >= 2 blocks (v7x has 2 TensorCores)
_BYPASS_BYTES = 256 << 10       # below this, launch + DMA overhead exceeds doing nothing
_MAX_COLS = 8192                # wide lane-dense slabs -> long unmasked vst runs


def _identity_kernel(x_ref, o_ref):
    # Bit-exact copy of the current tile.
    o_ref[...] = x_ref[...]


def _sublane_pack(dtype):
    """Sublane rows of one vreg tile for this dtype: 8 (f32), 16 (bf16), 32 (int8/fp8)."""
    return max(8, 32 // jnp.dtype(dtype).itemsize)


def _lane_dense_2d(n, sub):
    """Pick (rows, cols) with cols % 128 == 0 and rows % sub == 0, or None."""
    if n % (128 * sub) != 0:
        return None
    cols = 128
    rows = n // cols
    # Grow cols while rows stays a multiple of the sublane pack.
    while cols < _MAX_COLS and rows % (2 * sub) == 0:
        cols *= 2
        rows //= 2
    return rows, cols


def identity_forward(x, *, force_kernel=False, donate=False):
    """Pallas implementation of Identity.forward: returns x (bit-exact)."""
    orig_shape, dtype = x.shape, x.dtype
    n = x.size
    itemsize = jnp.dtype(dtype).itemsize
    nbytes = n * itemsize

    # Identity has zero compute: for tiny inputs the kernel launch plus two
    # HBM DMAs cost more than doing nothing, so just return x.
    if n == 0 or (not force_kernel and nbytes < _BYPASS_BYTES):
        return x

    sub = _sublane_pack(dtype)
    shape2d = _lane_dense_2d(n, sub)
    if shape2d is None:
        # Size is not a multiple of (sublane_pack * 128): a fully-aligned
        # slab is impossible without padding, and identity is free to XLA,
        # so bypass rather than emit masked partial stores / risk VMEM OOM.
        return x
    rows, cols = shape2d

    # Fixed-size, sublane-aligned row blocks (~2 MiB each); the ragged last
    # block is handled by pl.cdiv + Pallas masking, not by shrinking the tile.
    row_bytes = cols * itemsize
    rows_per_block = max(sub, (_TARGET_BLOCK_BYTES // row_bytes) // sub * sub)
    if nbytes >= _MIN_GRID_BYTES:
        # At least two grid steps so v7x can shard the parallel axis across
        # both TensorCores (pure no-op on single-TC v5e/v6e).
        half_rows = (rows // 2 + sub - 1) // sub * sub
        rows_per_block = min(rows_per_block, max(sub, half_rows))
    rows_per_block = min(rows_per_block, rows)
    grid = (pl.cdiv(rows, rows_per_block),)

    x2 = x.reshape(rows, cols)
    cost = pl.CostEstimate(flops=0, transcendentals=0, bytes_accessed=2 * nbytes)

    out2 = pl.pallas_call(
        _identity_kernel,
        out_shape=jax.ShapeDtypeStruct((rows, cols), dtype),
        grid=grid,
        in_specs=[pl.BlockSpec((rows_per_block, cols), lambda i: (i, 0))],
        out_specs=pl.BlockSpec((rows_per_block, cols), lambda i: (i, 0)),
        compiler_params=pltpu.CompilerParams(
            dimension_semantics=("parallel",),
        ),
        cost_estimate=cost,
        # Removes the new HBM output allocation; only valid if the caller
        # actually donates x (it must not be read afterwards).
        input_output_aliases={0: 0} if donate else {},
    )(x2)
    return out2.reshape(orig_shape)


if __name__ == "__main__":
    # Small 4D input consistent with the module's typical usage.
    B, C, H, W = 2, 4, 16, 16
    key = jax.random.PRNGKey(0)
    x = jax.random.normal(key, (B, C, H, W), jnp.float32)

    # 1) Exercise the Pallas copy kernel (force past the small-input bypass).
    out = jax.block_until_ready(identity_forward(x, force_kernel=True))
    assert out.shape == x.shape and out.dtype == x.dtype
    assert jnp.array_equal(out, x), "Identity output must be bit-exact"

    # 2) Default path for tiny inputs: bypass (identity is free).
    out_bypass = jax.block_until_ready(identity_forward(x))
    assert jnp.array_equal(out_bypass, x)

    # 3) Dtype-aware tiling path (bf16 -> 16-row sublane pack), still bit-exact.
    x_bf16 = x.astype(jnp.bfloat16)
    out_bf16 = jax.block_until_ready(identity_forward(x_bf16, force_kernel=True))
    assert out_bf16.dtype == jnp.bfloat16
    assert jnp.array_equal(out_bf16, x_bf16)

    print("KERNEL_OK")
</pallas_src>

<mosaic_0001>
module attributes {stable_mosaic.version = 11 : i64} {
  func.func @_identity_kernel(%arg0: i32, %arg1: memref<8x256xf32, #tpu.memory_space<vmem>>, %arg2: memref<8x256xf32, #tpu.memory_space<vmem>>) attributes {dimension_semantics = [#tpu.dimension_semantics<parallel>], iteration_bounds = array<i64: 1>, scalar_prefetch = 0 : i64, scratch_operands = 0 : i64, tpu.core_type = #tpu.core_type<tc>, window_params = [{transform_indices = @transform_0, window_bounds = array<i64: 8, 256>}, {transform_indices = @transform_1, window_bounds = array<i64: 8, 256>}]} {
    %c0 = arith.constant 0 : index
    %c0_0 = arith.constant 0 : index
    %0 = vector.load %arg1[%c0, %c0_0] : memref<8x256xf32, #tpu.memory_space<vmem>>, vector<8x256xf32>
    %c0_1 = arith.constant 0 : index
    %c0_2 = arith.constant 0 : index
    %1 = vector.load %arg2[%c0_1, %c0_2] : memref<8x256xf32, #tpu.memory_space<vmem>>, vector<8x256xf32>
    tpu.vector_store %arg2[%c0_1, %c0_2], %0 {strides = array<i32>} : memref<8x256xf32, #tpu.memory_space<vmem>>, vector<8x256xf32>,
    return
  }
  func.func @transform_0(%arg0: i32) -> (i32, i32) {
    %c0_i32 = arith.constant 0 : i32
    %c0_i32_0 = arith.constant 0 : i32
    return %arg0, %c0_i32 : i32, i32
  }
  func.func @transform_1(%arg0: i32) -> (i32, i32) {
    %c0_i32 = arith.constant 0 : i32
    %c0_i32_0 = arith.constant 0 : i32
    return %arg0, %c0_i32 : i32, i32
  }
}

</mosaic_0001>

<bundles_post_ra>
// kernel: tpu_custom_call.1
= control target key start
LH: loop header
LB: loop body
LE: loop exit
PB: predicated region body
PF: predicated region fallthrough
CT: control target
= control target key end

     0   :  { %6 = vsyncpa [#allocation3], 0  ;;  %s104_s0 = inlined_call_operand.hbm [shape: f32[8,256], index: 0, kind: input, shape index: {}]   ;;  %s105_s1 = inlined_call_operand.hbm [shape: f32[8,256], index: 1, kind: output, shape index: {}]  }
   0x1   :  { %7 = vsyncpa [#allocation4], 0  ;;  %s86_s6 = smov [#allocation2]  }
   0x2   :  { %s14_s7 = sshll.u32 %s86_s6, 4  ;;  %s15_s7 = int_to_ptr.vmem [resolvable:$true] %s14_s7 }
   0x3   :  { %s50_s8 = scalar_lea.vmem %s15_s7, 256  ;;  %p55_p1 = scmp.lt.s32.totalorder %s15_s7, %s15_s7 }
   0x4   :  { %p51_p0 = scmp.ne.s32.totalorder %s15_s7, %s50_s8  ;;  %p56_p2 = scmp.lt.s32.totalorder %s50_s8, %s50_s8 }
   0x6   :  { %p57_p3 = por %p56_p2, %p55_p1 }
   0x8   :  { %p58_p4 = pnand %p57_p3, %p51_p0 }
   0xa   :  { %61 = shalt.err (!%p58_p4)
}
   0xb   :  { %17 = dma.hbm_to_vmem [thread:$0]  %s104_s0, 256, %s15_s7, [#allocation3]  }
   0xc   :  { %82 = dma.done.wait [#allocation3], 256  }
   0xd   :  { %83 = vsyncadd [#allocation3], 4294967040  ;;  %s87_s11 = smov [#allocation5]   ;;  %v21_v0 = vld [vmem:[#allocation2] sm:$0xff]  ;;  %v22_v1 = vld [vmem:[#allocation2 + $0x8] sm:$0xff] }
   0xe   :  { %s31_s12 = sshll.u32 %s87_s11, 4  ;;  %23 = vst [vmem:[#allocation5] sm:$0xff] %v21_v0  ;;  %24 = vst [vmem:[#allocation5 + $0x8] sm:$0xff] %v22_v1  ;;  %s32_s12 = int_to_ptr.vmem [resolvable:$true] %s31_s12 }
   0xf   :  { %s62_s13 = scalar_lea.vmem %s32_s12, 256  ;;  %p67_p6 = scmp.lt.s32.totalorder %s32_s12, %s32_s12 }
  0x10   :  { %p63_p5 = scmp.ne.s32.totalorder %s32_s12, %s62_s13  ;;  %p68_p7 = scmp.lt.s32.totalorder %s62_s13, %s62_s13 }
  0x12   :  { %p69_p8 = por %p68_p7, %p67_p6 }
  0x14   :  { %p70_p9 = pnand %p69_p8, %p63_p5 }
  0x16   :  { %73 = shalt.err (!%p70_p9)
}
  0x17   :  { %34 = dma.vmem_to_hbm [thread:$0]  %s32_s12, 256, %s105_s1, [#allocation4]  }
  0x18   :  { %84 = dma.done.wait [#allocation4], 256  }
  0x19   :  { %85 = vsyncadd [#allocation4], 4294967040 }
  0x1a   :  { %38 = vsyncpa [#allocation3], 1 }
  0x1b   :  { %39 = vsyncpa [#allocation4], 1 }

</bundles_post_ra>
